<compile_context>
chip_gen: v5e
topology: v5e:2x2
jax: 0.10.0
libtpu: 0.0.40
codegen_flags: <defaults>
</compile_context>

<pallas_src>
import functools

import jax
import jax.numpy as jnp
from jax.experimental import pallas as pl
from jax.experimental.pallas import tpu as pltpu


def _round_up(n, m):
    return ((n + m - 1) // m) * m


def _policy_kernel(x_ref, w1_ref, w2_ref, wm_ref, b1_ref, b2_ref, bm_ref,
                   mean_ref):
    """One batch tile: fc1 -> tanh -> fc2 -> tanh -> mean head.

    x_ref:    (TB, sd_pad)       bf16   (batch tile of states)
    w1_ref:   (sd_pad, h_pad)    bf16   resident
    w2_ref:   (h_pad, h_pad)     bf16   resident
    wm_ref:   (h_pad, a_pad)     bf16   resident
    b1_ref:   (1, h_pad)         f32    resident
    b2_ref:   (1, h_pad)         f32    resident
    bm_ref:   (1, a_pad)         f32    resident
    mean_ref: (TB, a_pad)        f32    lane-dense, action-padded output slab
    """
    f32 = jnp.float32
    bf16 = jnp.bfloat16

    # bf16 MXU matmuls, f32 accumulation; bias add + tanh stay in f32.
    h1 = jnp.tanh(
        jnp.dot(x_ref[...], w1_ref[...], preferred_element_type=f32)
        + b1_ref[...])
    h2 = jnp.tanh(
        jnp.dot(h1.astype(bf16), w2_ref[...], preferred_element_type=f32)
        + b2_ref[...])
    mean_ref[...] = (
        jnp.dot(h2.astype(bf16), wm_ref[...], preferred_element_type=f32)
        + bm_ref[...])


def pack_policy_params(w1, b1, w2, b2, wm, bm):
    """Zero-pad + bf16-cast the weights ONCE (hoisted out of the hot path).

    Weights are in (in, out) layout (i.e. transposed PyTorch nn.Linear weight).
    Zero padding guarantees padded lanes stay exactly 0 through tanh, so valid
    lanes match the unpadded math.
    """
    state_dim, hidden_dim = w1.shape
    action_dim = wm.shape[1]
    sd_pad = _round_up(state_dim, 8)
    h_pad = _round_up(hidden_dim, 128)
    a_pad = _round_up(action_dim, 128)
    bf16, f32 = jnp.bfloat16, jnp.float32

    w1_p = jnp.zeros((sd_pad, h_pad), bf16).at[:state_dim, :hidden_dim].set(
        w1.astype(bf16))
    w2_p = jnp.zeros((h_pad, h_pad), bf16).at[:hidden_dim, :hidden_dim].set(
        w2.astype(bf16))
    wm_p = jnp.zeros((h_pad, a_pad), bf16).at[:hidden_dim, :action_dim].set(
        wm.astype(bf16))
    b1_p = jnp.zeros((1, h_pad), f32).at[0, :hidden_dim].set(b1.astype(f32))
    b2_p = jnp.zeros((1, h_pad), f32).at[0, :hidden_dim].set(b2.astype(f32))
    bm_p = jnp.zeros((1, a_pad), f32).at[0, :action_dim].set(bm.astype(f32))
    return w1_p, w2_p, wm_p, b1_p, b2_p, bm_p


def reinforce_policy_forward_packed(x, w1_p, w2_p, wm_p, b1_p, b2_p, bm_p,
                                    log_std, *, action_dim, block_b=512):
    """Forward from pre-packed params.  x: (B, state_dim) float.

    Returns (mean [B, action_dim] f32, std [action_dim] f32).
    """
    if block_b % 8 != 0:
        raise ValueError("block_b must be a multiple of 8")
    B, state_dim = x.shape
    sd_pad, h_pad = w1_p.shape
    a_pad = wm_p.shape[1]
    f32, bf16 = jnp.float32, jnp.bfloat16

    # Batch tiling: multiple of 8; prefer >= 2 grid steps when the batch allows
    # it so v7x's two TensorCores both get work under dimension_semantics.
    b_pad = _round_up(B, 8)
    if b_pad <= 8:
        tb = b_pad
    elif b_pad <= 2 * block_b:
        tb = _round_up((b_pad + 1) // 2, 8)
        b_pad = 2 * tb
    else:
        tb = block_b
        b_pad = _round_up(B, tb)
    grid = (b_pad // tb,)

    # Activation padding (the only per-call layout plumbing left).
    x_p = jnp.zeros((b_pad, sd_pad), bf16).at[:B, :state_dim].set(
        x.astype(bf16))

    def _resident_spec(shape):
        # Constant index_map -> operand stays in VMEM across the whole grid.
        # Single-buffer it where the API allows (halves resident footprint).
        try:
            return pl.BlockSpec(shape, lambda i: (0, 0),
                                pipeline_mode=pl.Buffered(1))
        except (TypeError, AttributeError):
            return pl.BlockSpec(shape, lambda i: (0, 0))

    # Rough VMEM footprint estimate (lane dims pad to 128, sublanes to 8).
    def _vmem_bytes(shape, dtype, nbuf):
        r, c = shape
        return _round_up(r, 8) * _round_up(c, 128) * jnp.dtype(dtype).itemsize * nbuf

    est = (_vmem_bytes((sd_pad, h_pad), bf16, 1)
           + _vmem_bytes((h_pad, h_pad), bf16, 1)
           + _vmem_bytes((h_pad, a_pad), bf16, 1)
           + 2 * _vmem_bytes((1, h_pad), f32, 1)
           + _vmem_bytes((1, a_pad), f32, 1)
           + _vmem_bytes((tb, sd_pad), bf16, 2)
           + _vmem_bytes((tb, a_pad), f32, 2))
    cp_kwargs = dict(dimension_semantics=("parallel",))
    if est > (24 << 20):
        # Raise scoped VMEM above the 32 MiB default with headroom, but stay
        # below v7x's 64 MiB physical VMEM.
        cp_kwargs["vmem_limit_bytes"] = int(min(est + (8 << 20), 60 << 20))

    mean_pad = pl.pallas_call(
        _policy_kernel,
        grid=grid,
        in_specs=[
            # activations: blocked along batch (default 2-deep pipelining;
            # sweep pl.Buffered(3) only if xprof shows exposed DMA)
            pl.BlockSpec((tb, sd_pad), lambda i: (i, 0)),
            _resident_spec((sd_pad, h_pad)),   # W1
            _resident_spec((h_pad, h_pad)),    # W2
            _resident_spec((h_pad, a_pad)),    # Wm (action-padded columns only)
            _resident_spec((1, h_pad)),        # b1
            _resident_spec((1, h_pad)),        # b2
            _resident_spec((1, a_pad)),        # bm
        ],
        out_specs=pl.BlockSpec((tb, a_pad), lambda i: (i, 0)),
        out_shape=jax.ShapeDtypeStruct((b_pad, a_pad), f32),
        compiler_params=pltpu.CompilerParams(**cp_kwargs),
    )(x_p, w1_p, w2_p, wm_p, b1_p, b2_p, bm_p)

    mean = mean_pad[:B, :action_dim]
    # std is batch-independent (action_dim elements): compute in the wrapper.
    std = jnp.exp(log_std.astype(f32))
    return mean, std


def reinforce_policy_forward(x, w1, b1, w2, b2, wm, bm, log_std, *, block_b=512):
    """Convenience wrapper: pack (pad + bf16 cast) then run the kernel.

    For inference loops / training steps, call pack_policy_params() once and
    reuse reinforce_policy_forward_packed() to avoid re-copying the weights in
    HBM on every call.
    """
    packed = pack_policy_params(w1, b1, w2, b2, wm, bm)
    return reinforce_policy_forward_packed(
        x, *packed, log_std, action_dim=wm.shape[1], block_b=block_b)


def _torch_linear_init(key, fan_in, fan_out):
    """Mimic nn.Linear default init: U(-1/sqrt(fan_in), 1/sqrt(fan_in))."""
    kw, kb = jax.random.split(key)
    bound = 1.0 / jnp.sqrt(jnp.float32(fan_in))
    # stored as (in, out) == transposed PyTorch weight
    w = jax.random.uniform(kw, (fan_in, fan_out), jnp.float32, -bound, bound)
    b = jax.random.uniform(kb, (fan_out,), jnp.float32, -bound, bound)
    return w, b


if __name__ == "__main__":
    # Small shapes consistent with the module: a continuous-control policy.
    batch = 4
    state_dim = 8
    hidden_dim = 64
    action_dim = 2

    key = jax.random.PRNGKey(0)
    k_x, k1, k2, k3 = jax.random.split(key, 4)

    x = jax.random.normal(k_x, (batch, state_dim), jnp.float32)

    w1, b1 = _torch_linear_init(k1, state_dim, hidden_dim)
    w2, b2 = _torch_linear_init(k2, hidden_dim, hidden_dim)
    wm, bm = _torch_linear_init(k3, hidden_dim, action_dim)
    log_std = jnp.zeros((action_dim,), jnp.float32)  # nn.Parameter(torch.zeros)

    # Pack the weights ONCE (hoisted out of the per-call hot path), then jit
    # the packed forward.
    packed = pack_policy_params(w1, b1, w2, b2, wm, bm)
    fwd = jax.jit(functools.partial(reinforce_policy_forward_packed,
                                    action_dim=action_dim))
    mean, std = fwd(x, *packed, log_std)
    jax.block_until_ready((mean, std))

    # Reference check in plain JAX (f32).  Kernel matmuls use bf16 operands
    # with f32 accumulation, so tolerance is relaxed vs. the f32 reference.
    h1 = jnp.tanh(x @ w1 + b1)
    h2 = jnp.tanh(h1 @ w2 + b2)
    mean_ref = h2 @ wm + bm
    std_ref = jnp.exp(log_std)
    assert mean.shape == (batch, action_dim) and std.shape == (action_dim,)
    assert jnp.allclose(mean, mean_ref, atol=3e-2, rtol=3e-2), (
        float(jnp.max(jnp.abs(mean - mean_ref))))
    assert jnp.allclose(std, std_ref, atol=1e-6, rtol=1e-6)

    # TODO(synk): `act()` (epsilon-greedy host RNG, Normal sampling / log_prob,
    # dict-state concatenation) is host-side policy control flow, not part of
    # the forward hot path; omitted.
    print("KERNEL_OK")
</pallas_src>

<mosaic_0001>
module attributes {stable_mosaic.version = 11 : i64} {
  func.func @_policy_kernel(%arg0: i32, %arg1: memref<8x8xbf16, #tpu.memory_space<vmem>>, %arg2: memref<8x128xbf16, #tpu.memory_space<vmem>>, %arg3: memref<128x128xbf16, #tpu.memory_space<vmem>>, %arg4: memref<128x128xbf16, #tpu.memory_space<vmem>>, %arg5: memref<1x128xf32, #tpu.memory_space<vmem>>, %arg6: memref<1x128xf32, #tpu.memory_space<vmem>>, %arg7: memref<1x128xf32, #tpu.memory_space<vmem>>, %arg8: memref<8x128xf32, #tpu.memory_space<vmem>>) attributes {dimension_semantics = [#tpu.dimension_semantics<parallel>], iteration_bounds = array<i64: 1>, scalar_prefetch = 0 : i64, scratch_operands = 0 : i64, tpu.core_type = #tpu.core_type<tc>, window_params = [{transform_indices = @transform_0, window_bounds = array<i64: 8, 8>}, {pipeline_mode = #tpu.pipeline_mode<synchronous>, transform_indices = @transform_1, window_bounds = array<i64: 8, 128>}, {pipeline_mode = #tpu.pipeline_mode<synchronous>, transform_indices = @transform_2, window_bounds = array<i64: 128, 128>}, {pipeline_mode = #tpu.pipeline_mode<synchronous>, transform_indices = @transform_3, window_bounds = array<i64: 128, 128>}, {pipeline_mode = #tpu.pipeline_mode<synchronous>, transform_indices = @transform_4, window_bounds = array<i64: 1, 128>}, {pipeline_mode = #tpu.pipeline_mode<synchronous>, transform_indices = @transform_5, window_bounds = array<i64: 1, 128>}, {pipeline_mode = #tpu.pipeline_mode<synchronous>, transform_indices = @transform_6, window_bounds = array<i64: 1, 128>}, {transform_indices = @transform_7, window_bounds = array<i64: 8, 128>}]} {
    %c0 = arith.constant 0 : index
    %c0_0 = arith.constant 0 : index
    %0 = vector.load %arg1[%c0, %c0_0] : memref<8x8xbf16, #tpu.memory_space<vmem>>, vector<8x8xbf16>
    %c0_1 = arith.constant 0 : index
    %c0_2 = arith.constant 0 : index
    %1 = vector.load %arg2[%c0_1, %c0_2] : memref<8x128xbf16, #tpu.memory_space<vmem>>, vector<8x128xbf16>
    %cst = arith.constant dense<0.000000e+00> : vector<8x128xf32>
    %2 = tpu.matmul %0, %1, %cst {dimension_numbers = #tpu.dot_dimension_numbers<[1], [0], [0], [1], [0, 0, 1, 1], [], []>} : vector<8x8xbf16>, vector<8x128xbf16>, vector<8x128xf32> -> vector<8x128xf32>
    %c0_3 = arith.constant 0 : index
    %c0_4 = arith.constant 0 : index
    %3 = vector.load %arg5[%c0_3, %c0_4] : memref<1x128xf32, #tpu.memory_space<vmem>>, vector<1x128xf32>
    %4 = vector.broadcast %3 : vector<1x128xf32> to vector<8x128xf32>
    %5 = arith.addf %2, %4 : vector<8x128xf32>
    %6 = math.tanh %5 : vector<8x128xf32>
    %7 = arith.truncf %6 : vector<8x128xf32> to vector<8x128xbf16>
    %c0_5 = arith.constant 0 : index
    %c0_6 = arith.constant 0 : index
    %8 = vector.load %arg3[%c0_5, %c0_6] : memref<128x128xbf16, #tpu.memory_space<vmem>>, vector<128x128xbf16>
    %cst_7 = arith.constant dense<0.000000e+00> : vector<8x128xf32>
    %9 = tpu.matmul %7, %8, %cst_7 {dimension_numbers = #tpu.dot_dimension_numbers<[1], [0], [0], [1], [0, 0, 1, 1], [], []>} : vector<8x128xbf16>, vector<128x128xbf16>, vector<8x128xf32> -> vector<8x128xf32>
    %c0_8 = arith.constant 0 : index
    %c0_9 = arith.constant 0 : index
    %10 = vector.load %arg6[%c0_8, %c0_9] : memref<1x128xf32, #tpu.memory_space<vmem>>, vector<1x128xf32>
    %11 = vector.broadcast %10 : vector<1x128xf32> to vector<8x128xf32>
    %12 = arith.addf %9, %11 : vector<8x128xf32>
    %13 = math.tanh %12 : vector<8x128xf32>
    %14 = arith.truncf %13 : vector<8x128xf32> to vector<8x128xbf16>
    %c0_10 = arith.constant 0 : index
    %c0_11 = arith.constant 0 : index
    %15 = vector.load %arg4[%c0_10, %c0_11] : memref<128x128xbf16, #tpu.memory_space<vmem>>, vector<128x128xbf16>
    %cst_12 = arith.constant dense<0.000000e+00> : vector<8x128xf32>
    %16 = tpu.matmul %14, %15, %cst_12 {dimension_numbers = #tpu.dot_dimension_numbers<[1], [0], [0], [1], [0, 0, 1, 1], [], []>} : vector<8x128xbf16>, vector<128x128xbf16>, vector<8x128xf32> -> vector<8x128xf32>
    %c0_13 = arith.constant 0 : index
    %c0_14 = arith.constant 0 : index
    %17 = vector.load %arg7[%c0_13, %c0_14] : memref<1x128xf32, #tpu.memory_space<vmem>>, vector<1x128xf32>
    %18 = vector.broadcast %17 : vector<1x128xf32> to vector<8x128xf32>
    %19 = arith.addf %16, %18 : vector<8x128xf32>
    %c0_15 = arith.constant 0 : index
    %c0_16 = arith.constant 0 : index
    %20 = vector.load %arg8[%c0_15, %c0_16] : memref<8x128xf32, #tpu.memory_space<vmem>>, vector<8x128xf32>
    tpu.vector_store %arg8[%c0_15, %c0_16], %19 {strides = array<i32>} : memref<8x128xf32, #tpu.memory_space<vmem>>, vector<8x128xf32>,
    return
  }
  func.func @transform_0(%arg0: i32) -> (i32, i32) {
    %c0_i32 = arith.constant 0 : i32
    %c0_i32_0 = arith.constant 0 : i32
    return %arg0, %c0_i32 : i32, i32
  }
  func.func @transform_1(%arg0: i32) -> (i32, i32) {
    %c0_i32 = arith.constant 0 : i32
    %c0_i32_0 = arith.constant 0 : i32
    %c0_i32_1 = arith.constant 0 : i32
    return %c0_i32, %c0_i32_0 : i32, i32
  }
  func.func @transform_2(%arg0: i32) -> (i32, i32) {
    %c0_i32 = arith.constant 0 : i32
    %c0_i32_0 = arith.constant 0 : i32
    %c0_i32_1 = arith.constant 0 : i32
    return %c0_i32, %c0_i32_0 : i32, i32
  }
  func.func @transform_3(%arg0: i32) -> (i32, i32) {
    %c0_i32 = arith.constant 0 : i32
    %c0_i32_0 = arith.constant 0 : i32
    %c0_i32_1 = arith.constant 0 : i32
    return %c0_i32, %c0_i32_0 : i32, i32
  }
  func.func @transform_4(%arg0: i32) -> (i32, i32) {
    %c0_i32 = arith.constant 0 : i32
    %c0_i32_0 = arith.constant 0 : i32
    %c0_i32_1 = arith.constant 0 : i32
    return %c0_i32, %c0_i32_0 : i32, i32
  }
  func.func @transform_5(%arg0: i32) -> (i32, i32) {
    %c0_i32 = arith.constant 0 : i32
    %c0_i32_0 = arith.constant 0 : i32
    %c0_i32_1 = arith.constant 0 : i32
    return %c0_i32, %c0_i32_0 : i32, i32
  }
  func.func @transform_6(%arg0: i32) -> (i32, i32) {
    %c0_i32 = arith.constant 0 : i32
    %c0_i32_0 = arith.constant 0 : i32
    %c0_i32_1 = arith.constant 0 : i32
    return %c0_i32, %c0_i32_0 : i32, i32
  }
  func.func @transform_7(%arg0: i32) -> (i32, i32) {
    %c0_i32 = arith.constant 0 : i32
    %c0_i32_0 = arith.constant 0 : i32
    return %arg0, %c0_i32 : i32, i32
  }
}

</mosaic_0001>

<bundles_post_ra>
// kernel: reinforce_policy_forward_packed.1
= control target key start
LH: loop header
LB: loop body
LE: loop exit
PB: predicated region body
PF: predicated region fallthrough
CT: control target
= control target key end

     0   :  { %12 = vsyncpa [#allocation3], 0  ;;  %s471_s0 = inlined_call_operand.vmem [shape: bf16[8,8], index: 0, kind: input, shape index: {}]   ;;  %s472_s1 = inlined_call_operand.vmem [shape: bf16[8,128], index: 1, kind: input, shape index: {}]   ;;  %s473_s2 = inlined_call_operand.hbm [shape: bf16[128,128], index: 2, kind: input, shape index: {}]   ;;  %s474_s3 = inlined_call_operand.hbm [shape: bf16[128,128], index: 3, kind: input, shape index: {}]   ;;  %s475_s4 = inlined_call_operand.vmem [shape: f32[1,128], index: 4, kind: input, shape index: {}]   ;;  %s476_s5 = inlined_call_operand.vmem [shape: f32[1,128], index: 5, kind: input, shape index: {}]   ;;  %s477_s6 = inlined_call_operand.vmem [shape: f32[1,128], index: 6, kind: input, shape index: {}]   ;;  %s478_s7 = inlined_call_operand.vmem [shape: f32[8,128], index: 7, kind: output, shape index: {}]  }
   0x1   :  { %s22_s26 = sshll.u32 %s473_s2, 4  ;;  %s23_s26 = int_to_ptr.hbm [resolvable:$true] %s22_s26 }
   0x2   :  { %13 = vsyncpa [#allocation5], 0  ;;  %s403_s27 = smov [#allocation2]   ;;  %s35_s8 = sshll.u32 %s474_s3, 4  ;;  %s36_s8 = int_to_ptr.hbm [resolvable:$true] %s35_s8 }
   0x3   :  { %s24_s28 = sshll.u32 %s403_s27, 4  ;;  %s404_s9 = smov 64   ;;  %s25_s28 = int_to_ptr.vmem [resolvable:$true] %s24_s28 }
   0x4   :  { %s405_s10 = smov 4   ;;  %s406_s11 = smov [#allocation4]  }
   0x5   :  { %30 = dma.hbm_to_vmem [thread:$0]  %s23_s26, 1024, %s25_s28, [#allocation3], %s404_s9, %s404_s9, %s405_s10  }
   0x6   :  { %s37_s12 = sshll.u32 %s406_s11, 4  ;;  %s38_s12 = int_to_ptr.vmem [resolvable:$true] %s37_s12 }
   0x7   :  { %43 = dma.hbm_to_vmem [thread:$0]  %s36_s8, 1024, %s38_s12, [#allocation5], %s404_s9, %s404_s9, %s405_s10  }
   0x8   :  { %399 = dma.done.wait [#allocation3], 1024  }
   0x9   :  { %400 = vsyncadd [#allocation3], 4294966272 }
   0xa   :  { %401 = dma.done.wait [#allocation5], 1024  }
   0xb   :  { %402 = vsyncadd [#allocation5], 4294966272  ;;  %vm69_vm0 = vcmask 1043456   ;;  %v60_v0 = vld [vmem:[%s472_s1] sm:$0xf]  ;;  %v331_v1 = vld [vmem:[#allocation2 + $0x38] sm:$0xff] }
   0xc   :  { %v71_v2 = vsel %vm69_vm0, %v60_v0, 0  ;;  %v59_v3 = vld [vmem:[%s471_s0] sm:$0xf]  ;;  %vm65_vm1 = vcmask 64512   ;;  %156 = vmatpush.bf16.msra.mxu1 %v331_v1  ;;  %v330_v4 = vld [vmem:[#allocation2 + $0x30] sm:$0xff]  ;;  %v329_v5 = vld [vmem:[#allocation2 + $0x28] sm:$0xff] }
   0xd   :  { %80 = vmatpush.bf16.msra.mxu0 %v71_v2  ;;  %v328_v6 = vld [vmem:[#allocation2 + $0x20] sm:$0xff]  ;;  %v327_v7 = vld [vmem:[#allocation2 + $0x18] sm:$0xff]  ;;  %v326_v8 = vld [vmem:[#allocation2 + $0x10] sm:$0xff] }
   0xe   :  { %v325_v9 = vld [vmem:[#allocation2 + $0x8] sm:$0xff]  ;;  %v324_v10 = vld [vmem:[#allocation2] sm:$0xff]  ;;  %v339_v11 = vld [vmem:[#allocation4 + $0x38] sm:$0xff] }
   0xf   :  { %239 = vmatpush.bf16.msra.mxu2 %v339_v11  ;;  %v338_v12 = vld [vmem:[#allocation4 + $0x30] sm:$0xff]  ;;  %v337_v13 = vld [vmem:[#allocation4 + $0x28] sm:$0xff]  ;;  %v336_v14 = vld [vmem:[#allocation4 + $0x20] sm:$0xff] }
  0x10   :  { %259 = vmatmul.msk.bf16.vlgmr.msra.gmra.mxu0 %vm65_vm1, %v59_v3  ;;  %157 = vmatpush.bf16.msra.mxu1 %v330_v4  ;;  %v335_v15 = vld [vmem:[#allocation4 + $0x18] sm:$0xff]  ;;  %v344_v16 = vld [vmem:[%s475_s4] ss:$0 sm:$0xff]  ;;  %v334_v22 = vld [vmem:[#allocation4 + $0x10] sm:$0xff] }
  0x11   :  { %v333_v23 = vld [vmem:[#allocation4 + $0x8] sm:$0xff]  ;;  %v332_v24 = vld [vmem:[#allocation4] sm:$0xff] }
  0x12   :  { %v345_v25 = vld [vmem:[%s476_s5] ss:$0 sm:$0xff] }
  0x13   :  { %240 = vmatpush.bf16.msra.mxu2 %v338_v12  ;;  %v346_v31 = vld [vmem:[%s477_s6] ss:$0 sm:$0xff] }
  0x14   :  { %158 = vmatpush.bf16.msra.mxu1 %v329_v5 }
  0x17   :  { %241 = vmatpush.bf16.msra.mxu2 %v337_v13 }
  0x18   :  { %159 = vmatpush.bf16.msra.mxu1 %v328_v6 }
  0x1b   :  { %242 = vmatpush.bf16.msra.mxu2 %v336_v14 }
  0x1c   :  { %160 = vmatpush.bf16.msra.mxu1 %v327_v7 }
  0x1f   :  { %243 = vmatpush.bf16.msra.mxu2 %v335_v15 }
  0x20   :  { %161 = vmatpush.bf16.msra.mxu1 %v326_v8 }
  0x23   :  { %244 = vmatpush.bf16.msra.mxu2 %v334_v22 }
  0x24   :  { %162 = vmatpush.bf16.msra.mxu1 %v325_v9 }
  0x27   :  { %245 = vmatpush.bf16.msra.mxu2 %v333_v23 }
  0x28   :  { %163 = vmatpush.bf16.msra.mxu1 %v324_v10 }
  0x2b   :  { %246 = vmatpush.bf16.msra.mxu2 %v332_v24 }
  0x8d   :  { %v82_v17 = vpop.f32.mrf.mxu0 }
  0x8e   :  { %v83_v18 = vadd.f32 %v344_v16, %v82_v17 }
  0x90   :  { %347 = vtanh.f32 %v83_v18 }
  0x95   :  { %v84_v19 = vpop.f32.mrf.mxu0 }
  0x96   :  { %v348_v20 = vpop.eup %347 }
  0x97   :  { %v87_v21 = vpack.c.bf16 %v348_v20, %v348_v20 }
  0x99   :  { %164 = vmatmul.bf16.vlgmr.msra.gmra.mxu1 %v87_v21 }
 0x116   :  { %v165_v26 = vpop.f32.mrf.mxu1 }
 0x117   :  { %v166_v27 = vadd.f32 %v345_v25, %v165_v26 }
 0x119   :  { %349 = vtanh.f32 %v166_v27 }
 0x11e   :  { %v167_v28 = vpop.f32.mrf.mxu1 }
 0x11f   :  { %v350_v29 = vpop.eup %349 }
 0x120   :  { %v170_v30 = vpack.c.bf16 %v350_v29, %v350_v29 }
 0x122   :  { %247 = vmatmul.bf16.vlgmr.msra.gmra.mxu2 %v170_v30 }
 0x1a5   :  { %v248_v32 = vpop.f32.mrf.mxu2 }
 0x1a6   :  { %v249_v33 = vadd.f32 %v346_v31, %v248_v32 }
 0x1a8   :  { %252 = vst [vmem:[%s478_s7] sm:$0xff] %v249_v33 }
 0x1ad   :  { %v250_v34 = vpop.f32.mrf.mxu2 }
 0x1ae   :  { %257 = vsyncpa [#allocation3], 1 }
 0x1af   :  { %258 = vsyncpa [#allocation5], 1 }

</bundles_post_ra>
